<compile_context>
chip_gen: v7x
topology: tpu7x:2x2x1
jax: 0.10.0
libtpu: 0.0.40
codegen_flags: <defaults>
</compile_context>

<pallas_src>
import math

import jax
import jax.numpy as jnp
from jax import lax
from jax.experimental import pallas as pl
from jax.experimental.pallas import tpu as pltpu

# ---- small problem sizes consistent with the module ----
B, T, C = 2, 8, 32
NUM_HEADS = 4
HEAD_DIM = C // NUM_HEADS
COND = 16
FF = 4 * C                   # 128
EPS = 1e-6
NEG_INF = -1e9
SM_SCALE = 1.0 / math.sqrt(HEAD_DIM)

BT = B * T                   # 16  rows of the flat (batch*time, channel) layout
BHT = B * NUM_HEADS * T      # 64  rows of the head-replicated attention layout
LANES = 128                  # lane-dense slab width

F32 = jnp.float32
BF16 = jnp.bfloat16


def _gelu_tanh(x):
    c = math.sqrt(2.0 / math.pi)
    return 0.5 * x * (1.0 + jnp.tanh(c * (x + 0.044715 * x * x * x)))


# ------------------------------------------------------------------
# Single fused kernel: whole batch, one invocation, 4 lane-dense slabs.
# ------------------------------------------------------------------
def ada_transformer_block_kernel(act_ref, const_ref, w_ref, bias_ref, out_ref):
    # act_ref   [BT, 128]  f32 : lanes 0:C = x, C:2C = x_mask, 2C:2C+COND = cond
    # const_ref [80, 128]  bf16: rows 0:64 -> lanes 0:16 E, 16:48 head mask,
    #                            48:112 additive attn-mask bias; rows 64:80 ->
    #                            lanes 0:64 reduce matrix R (= E.T)
    # w_ref     [112,128]  bf16: rows 0:32 [wq*scale|wk|wv|wo], 32:64 ff_w1,
    #                            64:96 ff_w2.T, 96:112 [ada1_w|gate_w|ada2_w]
    # bias_ref  [8, 128]   f32 : packed bias rows (see pack_params)
    # out_ref   [BT, 128]  f32 : result tiled 4x across lanes (lane-dense store)
    x = act_ref[:, 0:C]
    xmask = act_ref[:, C:2 * C]
    cond_bf = act_ref[:, 2 * C:2 * C + COND].astype(BF16)

    e = const_ref[0:BHT, 0:BT].astype(F32)                    # exact 0/1 expand
    hm = const_ref[0:BHT, BT:BT + C].astype(F32)              # head lane mask
    mbias = const_ref[0:BHT, BT + C:BT + C + BHT].astype(F32)  # additive bias
    r = const_ref[BHT:BHT + BT, 0:BHT].astype(F32)            # exact 0/1 reduce

    bias = bias_ref[...]

    # ---- cond-derived vectors (ada1 scale | gate | ada2 scale): one bf16 dot ----
    cs = jnp.dot(cond_bf, w_ref[3 * C:3 * C + COND, :], preferred_element_type=F32)
    scale1 = cs[:, 0:C] + bias[2:3, 0:C]
    gate = cs[:, C:2 * C]
    scale2 = cs[:, 2 * C:3 * C] + bias[3:4, 0:C]

    # ---- AdaRMSNorm (attn) ----
    inv1 = lax.rsqrt(jnp.mean(x * x, axis=-1, keepdims=True) + EPS)
    xn = x * inv1 * scale1

    # ---- fused QKV projection (full 128-lane dot) + head replication ----
    qkv = jnp.dot(xn.astype(BF16), w_ref[0:C, :],
                  preferred_element_type=F32) + bias[0:1, :]        # [BT, 128]
    qkv_rep = jnp.dot(e, qkv, preferred_element_type=F32)           # [BHT, 128]

    q = qkv_rep[:, 0:C]                  # SM_SCALE already folded into wq / bq
    k = qkv_rep[:, C:2 * C] * hm         # zero outside this row's head lanes
    v = qkv_rep[:, 2 * C:3 * C] * hm

    # ---- fold W_o into V now: runs concurrently with scores + softmax ----
    v_o = jnp.dot(v.astype(BF16), w_ref[0:C, 3 * C:4 * C],
                  preferred_element_type=F32)                       # [BHT, C]

    # ---- one big score matmul over all (batch, head) blocks ----
    s = lax.dot_general(q.astype(BF16), k.astype(BF16),
                        (((1,), (1,)), ((), ())),
                        preferred_element_type=F32)                 # [BHT, BHT]
    s = s + mbias                       # additive-only mask (scale pre-folded)
    s = s - jnp.max(s, axis=-1, keepdims=True)
    p = jnp.exp(s)
    p = p * pl.reciprocal(jnp.sum(p, axis=-1, keepdims=True), approx=True)

    o_rep = jnp.dot(p.astype(BF16), v_o.astype(BF16),
                    preferred_element_type=F32)                     # [BHT, C]
    attn = jnp.dot(r, o_rep, preferred_element_type=F32)            # [BT, C]
    attn = attn + bias[4:5, 0:C]

    x1 = x + attn

    # ---- AdaRMSNorm (ff) + FeedForward ----
    inv2 = lax.rsqrt(jnp.mean(x1 * x1, axis=-1, keepdims=True) + EPS)
    xn2 = x1 * inv2 * scale2

    h1 = jnp.dot(xn2.astype(BF16), w_ref[C:2 * C, :],
                 preferred_element_type=F32) + bias[1:2, :]         # [BT, FF]
    h1 = _gelu_tanh(h1)
    y = lax.dot_general(h1.astype(BF16), w_ref[2 * C:3 * C, :],
                        (((1,), (1,)), ((), ())),
                        preferred_element_type=F32) + bias[5:6, 0:C]
    y = y * xmask

    res = x1 + gate * y                                             # [BT, C]
    # lane-dense full-width store (unmasked vst); wrapper keeps lanes 0:C
    out_ref[...] = jnp.concatenate([res, res, res, res], axis=1)


# ------------------------------------------------------------------
# One-time packing (hoisted out of the per-call hot path).
# ------------------------------------------------------------------
def build_static_constants():
    """E (expand), R (reduce), head lane mask — depend only on static shapes."""
    rr = jnp.arange(BHT)
    rb = rr // (NUM_HEADS * T)
    rh = (rr // T) % NUM_HEADS
    ri = rr % T
    ss = jnp.arange(BT)
    sb, si = ss // T, ss % T
    E = ((rb[:, None] == sb[None, :]) & (ri[:, None] == si[None, :])).astype(F32)
    R = E.T
    hm = (jnp.arange(C)[None, :] // HEAD_DIM == rh[:, None]).astype(F32)
    return E, R, hm


def build_mask_bias(attn_mask):
    """Additive-only mask bias; rebuilt only when attn_mask changes."""
    rr = jnp.arange(BHT)
    rb = rr // (NUM_HEADS * T)
    rh = (rr // T) % NUM_HEADS
    ri = rr % T
    same_block = (rb[:, None] == rb[None, :]) & (rh[:, None] == rh[None, :])
    am = attn_mask[rb[:, None], ri[:, None], ri[None, :]] > 0.0
    valid = same_block & am
    # valid -> 0; masked-within-block -> NEG_INF; other blocks -> 2*NEG_INF
    # (never wins the row max because every row owns its diagonal block).
    return jnp.where(valid, 0.0,
                     jnp.where(same_block, NEG_INF, 2.0 * NEG_INF)).astype(F32)


def pack_const_slab(E, R, hm, mask_bias):
    top = jnp.concatenate(
        [E, hm, mask_bias, jnp.zeros((BHT, LANES - BT - C - BHT), F32)], axis=1)
    bot = jnp.concatenate([R, jnp.zeros((BT, LANES - BHT), F32)], axis=1)
    return jnp.concatenate([top, bot], axis=0).astype(BF16)          # [80, 128]


def pack_params(p):
    """bf16 weight slab + f32 bias slab, built once per parameter set."""
    attn_w = jnp.concatenate(
        [p["wq"] * SM_SCALE, p["wk"], p["wv"], p["wo"]], axis=1)      # [C, 4C]
    cond_w = jnp.concatenate([p["ada1_w"], p["gate_w"], p["ada2_w"]], axis=1)
    cond_w = jnp.pad(cond_w, ((0, 0), (0, LANES - 3 * C)))            # [COND, 128]
    w_slab = jnp.concatenate(
        [attn_w, p["ff_w1"], p["ff_w2"].T, cond_w], axis=0).astype(BF16)  # [112,128]

    def row(v):
        v = v.reshape(1, -1)
        return jnp.pad(v, ((0, 0), (0, FF - v.shape[1])))

    bias_slab = jnp.concatenate([
        row(jnp.concatenate([p["bq"] * SM_SCALE, p["bk"], p["bv"]])),  # 0: qkv bias
        row(p["ff_b1"]),                                              # 1: ff bias 1
        row(p["ada1_b"]),                                             # 2: ada1 bias
        row(p["ada2_b"]),                                             # 3: ada2 bias
        row(p["bo"]),                                                 # 4: out-proj bias
        row(p["ff_b2"]),                                              # 5: ff bias 2
        jnp.zeros((2, FF), F32),                                      # pad to 8 rows
    ], axis=0)                                                        # [8, 128] f32
    return w_slab, bias_slab


# ------------------------------------------------------------------
# Jitted per-call wrapper: only activation packing + the pallas_call.
# ------------------------------------------------------------------
@jax.jit
def ada_transformer_block(x, cond, x_mask, w_slab, bias_slab, const_slab):
    x2d = x.reshape(BT, C)
    xm2d = jnp.broadcast_to(x_mask, (B, T, C)).reshape(BT, C)
    cond_rep = jnp.repeat(cond, T, axis=0)                            # [BT, COND]
    act = jnp.concatenate(
        [x2d, xm2d, cond_rep, jnp.zeros((BT, LANES - 2 * C - COND), F32)],
        axis=1)                                                       # [BT, 128]

    vmem = pl.BlockSpec(memory_space=pltpu.MemorySpace.VMEM)
    out = pl.pallas_call(
        ada_transformer_block_kernel,
        out_shape=jax.ShapeDtypeStruct((BT, LANES), F32),
        in_specs=[vmem, vmem, vmem, vmem],
        out_specs=vmem,
        # No grid: whole problem is a few KB of VMEM; one invocation avoids the
        # per-step pipeline overhead.  (If B*T ever grows, add a "parallel"
        # batch grid axis and re-budget tiles against v7x's 64 MiB VMEM.)
    )(act, const_slab, w_slab, bias_slab)
    return out[:, 0:C].reshape(B, T, C)


# ------------------------------------------------------------------
# Pure-JAX reference (module semantics).  `op_dtype` controls the matmul
# operand precision so the kernel can be checked both against bf16-operand
# math (tight) and full-f32 module math (quantization-bounded).
# ------------------------------------------------------------------
def reference(x, cond, x_mask, attn_mask, p, op_dtype=F32):
    def mm(a, b):
        return jnp.dot(a.astype(op_dtype), b.astype(op_dtype),
                       preferred_element_type=F32)

    def rms(z):
        return z * lax.rsqrt(jnp.mean(z * z, axis=-1, keepdims=True) + EPS)

    scale1 = mm(cond, p["ada1_w"]) + p["ada1_b"]                     # [B, C]
    xn = rms(x) * scale1[:, None]

    q = (mm(xn, p["wq"]) + p["bq"]).reshape(B, T, NUM_HEADS, HEAD_DIM)
    k = (mm(xn, p["wk"]) + p["bk"]).reshape(B, T, NUM_HEADS, HEAD_DIM)
    v = (mm(xn, p["wv"]) + p["bv"]).reshape(B, T, NUM_HEADS, HEAD_DIM)
    s = jnp.einsum("bqhd,bkhd->bhqk", q.astype(op_dtype), k.astype(op_dtype),
                   preferred_element_type=F32) * SM_SCALE
    s = jnp.where(attn_mask[:, None] > 0.0, s, NEG_INF)
    a = jax.nn.softmax(s, axis=-1)
    o = jnp.einsum("bhqk,bkhd->bqhd", a.astype(op_dtype), v.astype(op_dtype),
                   preferred_element_type=F32).reshape(B, T, C)
    o = mm(o, p["wo"]) + p["bo"]
    x1 = x + o

    gate = mm(cond, p["gate_w"])[:, None]                            # [B, 1, C]
    scale2 = mm(cond, p["ada2_w"]) + p["ada2_b"]
    xn2 = rms(x1) * scale2[:, None]
    h1 = _gelu_tanh(mm(xn2, p["ff_w1"]) + p["ff_b1"])
    y = (mm(h1, p["ff_w2"]) + p["ff_b2"]) * x_mask
    return x1 + gate * y


if __name__ == "__main__":
    key = jax.random.PRNGKey(0)
    keys = jax.random.split(key, 20)

    def nrm(k, shape, scale=0.1):
        return (scale * jax.random.normal(k, shape)).astype(F32)

    # ---- deterministic parameters (shapes implied by the module __init__) ----
    params = {
        "ada1_w": nrm(keys[0], (COND, C)), "ada1_b": 1.0 + nrm(keys[1], (C,)),
        "wq": nrm(keys[2], (C, C)), "bq": nrm(keys[3], (C,)),
        "wk": nrm(keys[4], (C, C)), "bk": nrm(keys[5], (C,)),
        "wv": nrm(keys[6], (C, C)), "bv": nrm(keys[7], (C,)),
        "wo": nrm(keys[8], (C, C)), "bo": nrm(keys[9], (C,)),
        "ada2_w": nrm(keys[10], (COND, C)), "ada2_b": 1.0 + nrm(keys[11], (C,)),
        "gate_w": nrm(keys[12], (COND, C)),
        "ff_w1": nrm(keys[13], (C, FF)), "ff_b1": nrm(keys[14], (FF,)),
        "ff_w2": nrm(keys[15], (FF, C)), "ff_b2": nrm(keys[16], (C,)),
    }

    # ---- inputs ----
    x = nrm(keys[17], (B, T, C), scale=1.0)
    cond = nrm(keys[18], (B, COND), scale=1.0)
    lengths = jnp.array([T, T - 2], dtype=jnp.int32)                  # 2nd seq padded
    t_idx = jnp.arange(T)
    x_mask = (t_idx[None, :] < lengths[:, None]).astype(F32)[..., None]   # [B, T, 1]
    attn_mask = (x_mask[:, :, 0][:, :, None]
                 * x_mask[:, :, 0][:, None, :]).astype(F32)               # [B, T, T]

    # ---- one-time packing (outside the per-call hot path) ----
    E, R, hm = build_static_constants()
    mask_bias = build_mask_bias(attn_mask)          # rebuilt only if attn_mask changes
    const_slab = pack_const_slab(E, R, hm, mask_bias)
    w_slab, bias_slab = pack_params(params)

    out = ada_transformer_block(x, cond, x_mask, w_slab, bias_slab, const_slab)
    out = jax.block_until_ready(out)
    assert out.shape == (B, T, C)

    # Tight check: reference with the same bf16 matmul-operand precision as the
    # kernel (residual difference: W_o fold point, approx reciprocal, fold of
    # SM_SCALE into wq before bf16 rounding).
    ref_bf16 = reference(x, cond, x_mask, attn_mask, params, op_dtype=BF16)
    err_bf16 = float(jnp.max(jnp.abs(out - ref_bf16)))
    assert err_bf16 < 1e-2, err_bf16

    # Module-semantics check: full-f32 reference; deviation bounded by the
    # bf16 operand quantization mandated by the perf review.
    ref_f32 = reference(x, cond, x_mask, attn_mask, params, op_dtype=F32)
    err_f32 = float(jnp.max(jnp.abs(out - ref_f32)))
    assert err_f32 < 3e-2, err_f32

    print("KERNEL_OK")
</pallas_src>

<mosaic_0001>
module attributes {stable_mosaic.version = 11 : i64} {
  func.func @ada_transformer_block_kernel(%arg0: memref<16x128xf32, #tpu.memory_space<vmem>>, %arg1: memref<80x128xbf16, #tpu.memory_space<vmem>>, %arg2: memref<112x128xbf16, #tpu.memory_space<vmem>>, %arg3: memref<8x128xf32, #tpu.memory_space<vmem>>, %arg4: memref<16x128xf32, #tpu.memory_space<vmem>>) attributes {dimension_semantics = [], scalar_prefetch = 0 : i64, scratch_operands = 0 : i64, tpu.core_type = #tpu.core_type<tc>} {
    %c0 = arith.constant 0 : index
    %c0_0 = arith.constant 0 : index
    %0 = vector.load %arg0[%c0, %c0_0] : memref<16x128xf32, #tpu.memory_space<vmem>>, vector<16x32xf32>
    %c0_1 = arith.constant 0 : index
    %c32 = arith.constant 32 : index
    %1 = vector.load %arg0[%c0_1, %c32] : memref<16x128xf32, #tpu.memory_space<vmem>>, vector<16x32xf32>
    %c0_2 = arith.constant 0 : index
    %c64 = arith.constant 64 : index
    %2 = vector.load %arg0[%c0_2, %c64] : memref<16x128xf32, #tpu.memory_space<vmem>>, vector<16x16xf32>
    %3 = arith.truncf %2 : vector<16x16xf32> to vector<16x16xbf16>
    %c0_3 = arith.constant 0 : index
    %c0_4 = arith.constant 0 : index
    %4 = vector.load %arg1[%c0_3, %c0_4] : memref<80x128xbf16, #tpu.memory_space<vmem>>, vector<64x16xbf16>
    %5 = arith.extf %4 : vector<64x16xbf16> to vector<64x16xf32>
    %c0_5 = arith.constant 0 : index
    %c16 = arith.constant 16 : index
    %6 = vector.load %arg1[%c0_5, %c16] : memref<80x128xbf16, #tpu.memory_space<vmem>>, vector<64x32xbf16>
    %7 = arith.extf %6 : vector<64x32xbf16> to vector<64x32xf32>
    %c0_6 = arith.constant 0 : index
    %c48 = arith.constant 48 : index
    %8 = vector.load %arg1[%c0_6, %c48] : memref<80x128xbf16, #tpu.memory_space<vmem>>, vector<64x64xbf16>
    %9 = arith.extf %8 : vector<64x64xbf16> to vector<64x64xf32>
    %c64_7 = arith.constant 64 : index
    %c0_8 = arith.constant 0 : index
    %10 = vector.load %arg1[%c64_7, %c0_8] : memref<80x128xbf16, #tpu.memory_space<vmem>>, vector<16x64xbf16>
    %11 = arith.extf %10 : vector<16x64xbf16> to vector<16x64xf32>
    %c0_9 = arith.constant 0 : index
    %c0_10 = arith.constant 0 : index
    %12 = vector.load %arg3[%c0_9, %c0_10] : memref<8x128xf32, #tpu.memory_space<vmem>>, vector<8x128xf32>
    %c96 = arith.constant 96 : index
    %c0_11 = arith.constant 0 : index
    %13 = vector.load %arg2[%c96, %c0_11] : memref<112x128xbf16, #tpu.memory_space<vmem>>, vector<16x128xbf16>
    %cst = arith.constant dense<0.000000e+00> : vector<16x128xf32>
    %14 = tpu.matmul %3, %13, %cst {dimension_numbers = #tpu.dot_dimension_numbers<[1], [0], [0], [1], [0, 0, 1, 1], [], []>} : vector<16x16xbf16>, vector<16x128xbf16>, vector<16x128xf32> -> vector<16x128xf32>
    %15 = vector.extract_strided_slice %14 {offsets = [0, 0], sizes = [16, 32], strides = [1, 1]} : vector<16x128xf32> to vector<16x32xf32>
    %16 = vector.extract_strided_slice %12 {offsets = [2, 0], sizes = [1, 32], strides = [1, 1]} : vector<8x128xf32> to vector<1x32xf32>
    %17 = vector.broadcast %16 : vector<1x32xf32> to vector<16x32xf32>
    %18 = arith.addf %15, %17 : vector<16x32xf32>
    %19 = vector.extract_strided_slice %14 {offsets = [0, 32], sizes = [16, 32], strides = [1, 1]} : vector<16x128xf32> to vector<16x32xf32>
    %20 = vector.extract_strided_slice %14 {offsets = [0, 64], sizes = [16, 32], strides = [1, 1]} : vector<16x128xf32> to vector<16x32xf32>
    %21 = vector.extract_strided_slice %12 {offsets = [3, 0], sizes = [1, 32], strides = [1, 1]} : vector<8x128xf32> to vector<1x32xf32>
    %22 = vector.broadcast %21 : vector<1x32xf32> to vector<16x32xf32>
    %23 = arith.addf %20, %22 : vector<16x32xf32>
    %24 = arith.mulf %0, %0 : vector<16x32xf32>
    %cst_12 = arith.constant dense<0.000000e+00> : vector<16xf32>
    %25 = vector.multi_reduction <add>, %24, %cst_12 [1] : vector<16x32xf32> to vector<16xf32>
    %26 = vector.shape_cast %25 : vector<16xf32> to vector<16x1xf32>
    %cst_13 = arith.constant 3.200000e+01 : f32
    %27 = vector.broadcast %cst_13 : f32 to vector<16x1xf32>
    %28 = arith.divf %26, %27 : vector<16x1xf32>
    %cst_14 = arith.constant 9.99999997E-7 : f32
    %29 = vector.broadcast %cst_14 : f32 to vector<16x1xf32>
    %30 = arith.addf %28, %29 : vector<16x1xf32>
    %31 = math.rsqrt %30 : vector<16x1xf32>
    %32 = vector.broadcast %31 : vector<16x1xf32> to vector<16x32xf32>
    %33 = arith.mulf %0, %32 : vector<16x32xf32>
    %34 = arith.mulf %33, %18 : vector<16x32xf32>
    %35 = arith.truncf %34 : vector<16x32xf32> to vector<16x32xbf16>
    %c0_15 = arith.constant 0 : index
    %c0_16 = arith.constant 0 : index
    %36 = vector.load %arg2[%c0_15, %c0_16] : memref<112x128xbf16, #tpu.memory_space<vmem>>, vector<32x128xbf16>
    %cst_17 = arith.constant dense<0.000000e+00> : vector<16x128xf32>
    %37 = tpu.matmul %35, %36, %cst_17 {dimension_numbers = #tpu.dot_dimension_numbers<[1], [0], [0], [1], [0, 0, 1, 1], [], []>} : vector<16x32xbf16>, vector<32x128xbf16>, vector<16x128xf32> -> vector<16x128xf32>
    %38 = vector.extract_strided_slice %12 {offsets = [0, 0], sizes = [1, 128], strides = [1, 1]} : vector<8x128xf32> to vector<1x128xf32>
    %39 = vector.broadcast %38 : vector<1x128xf32> to vector<16x128xf32>
    %40 = arith.addf %37, %39 : vector<16x128xf32>
    %cst_18 = arith.constant dense<0.000000e+00> : vector<64x128xf32>
    %41 = tpu.matmul %5, %40, %cst_18 {dimension_numbers = #tpu.dot_dimension_numbers<[1], [0], [0], [1], [0, 0, 1, 1], [], []>} : vector<64x16xf32>, vector<16x128xf32>, vector<64x128xf32> -> vector<64x128xf32>
    %42 = vector.extract_strided_slice %41 {offsets = [0, 0], sizes = [64, 32], strides = [1, 1]} : vector<64x128xf32> to vector<64x32xf32>
    %43 = vector.extract_strided_slice %41 {offsets = [0, 32], sizes = [64, 32], strides = [1, 1]} : vector<64x128xf32> to vector<64x32xf32>
    %44 = arith.mulf %43, %7 : vector<64x32xf32>
    %45 = vector.extract_strided_slice %41 {offsets = [0, 64], sizes = [64, 32], strides = [1, 1]} : vector<64x128xf32> to vector<64x32xf32>
    %46 = arith.mulf %45, %7 : vector<64x32xf32>
    %47 = arith.truncf %46 : vector<64x32xf32> to vector<64x32xbf16>
    %c0_19 = arith.constant 0 : index
    %c96_20 = arith.constant 96 : index
    %48 = vector.load %arg2[%c0_19, %c96_20] : memref<112x128xbf16, #tpu.memory_space<vmem>>, vector<32x32xbf16>
    %cst_21 = arith.constant dense<0.000000e+00> : vector<64x32xf32>
    %49 = tpu.matmul %47, %48, %cst_21 {dimension_numbers = #tpu.dot_dimension_numbers<[1], [0], [0], [1], [0, 0, 1, 1], [], []>} : vector<64x32xbf16>, vector<32x32xbf16>, vector<64x32xf32> -> vector<64x32xf32>
    %50 = arith.truncf %42 : vector<64x32xf32> to vector<64x32xbf16>
    %51 = arith.truncf %44 : vector<64x32xf32> to vector<64x32xbf16>
    %cst_22 = arith.constant dense<0.000000e+00> : vector<64x64xf32>
    %52 = tpu.matmul %50, %51, %cst_22 {dimension_numbers = #tpu.dot_dimension_numbers<[1], [1], [0], [0], [0, 0, 1, 0], [], []>} : vector<64x32xbf16>, vector<64x32xbf16>, vector<64x64xf32> -> vector<64x64xf32>
    %53 = arith.addf %52, %9 : vector<64x64xf32>
    %cst_23 = arith.constant dense<0xFF800000> : vector<64xf32>
    %54 = vector.multi_reduction <maximumf>, %53, %cst_23 [1] : vector<64x64xf32> to vector<64xf32>
    %55 = vector.shape_cast %54 : vector<64xf32> to vector<64x1xf32>
    %56 = vector.broadcast %55 : vector<64x1xf32> to vector<64x64xf32>
    %57 = arith.subf %53, %56 : vector<64x64xf32>
    %58 = math.exp %57 : vector<64x64xf32>
    %cst_24 = arith.constant dense<0.000000e+00> : vector<64xf32>
    %59 = vector.multi_reduction <add>, %58, %cst_24 [1] : vector<64x64xf32> to vector<64xf32>
    %60 = vector.shape_cast %59 : vector<64xf32> to vector<64x1xf32>
    %61 = tpu.reciprocal %60 {approx = true} : vector<64x1xf32> -> vector<64x1xf32>
    %62 = vector.broadcast %61 : vector<64x1xf32> to vector<64x64xf32>
    %63 = arith.mulf %58, %62 : vector<64x64xf32>
    %64 = arith.truncf %63 : vector<64x64xf32> to vector<64x64xbf16>
    %65 = arith.truncf %49 : vector<64x32xf32> to vector<64x32xbf16>
    %cst_25 = arith.constant dense<0.000000e+00> : vector<64x32xf32>
    %66 = tpu.matmul %64, %65, %cst_25 {dimension_numbers = #tpu.dot_dimension_numbers<[1], [0], [0], [1], [0, 0, 1, 1], [], []>} : vector<64x64xbf16>, vector<64x32xbf16>, vector<64x32xf32> -> vector<64x32xf32>
    %cst_26 = arith.constant dense<0.000000e+00> : vector<16x32xf32>
    %67 = tpu.matmul %11, %66, %cst_26 {dimension_numbers = #tpu.dot_dimension_numbers<[1], [0], [0], [1], [0, 0, 1, 1], [], []>} : vector<16x64xf32>, vector<64x32xf32>, vector<16x32xf32> -> vector<16x32xf32>
    %68 = vector.extract_strided_slice %12 {offsets = [4, 0], sizes = [1, 32], strides = [1, 1]} : vector<8x128xf32> to vector<1x32xf32>
    %69 = vector.broadcast %68 : vector<1x32xf32> to vector<16x32xf32>
    %70 = arith.addf %67, %69 : vector<16x32xf32>
    %71 = arith.addf %0, %70 : vector<16x32xf32>
    %72 = arith.mulf %71, %71 : vector<16x32xf32>
    %cst_27 = arith.constant dense<0.000000e+00> : vector<16xf32>
    %73 = vector.multi_reduction <add>, %72, %cst_27 [1] : vector<16x32xf32> to vector<16xf32>
    %74 = vector.shape_cast %73 : vector<16xf32> to vector<16x1xf32>
    %cst_28 = arith.constant 3.200000e+01 : f32
    %75 = vector.broadcast %cst_28 : f32 to vector<16x1xf32>
    %76 = arith.divf %74, %75 : vector<16x1xf32>
    %cst_29 = arith.constant 9.99999997E-7 : f32
    %77 = vector.broadcast %cst_29 : f32 to vector<16x1xf32>
    %78 = arith.addf %76, %77 : vector<16x1xf32>
    %79 = math.rsqrt %78 : vector<16x1xf32>
    %80 = vector.broadcast %79 : vector<16x1xf32> to vector<16x32xf32>
    %81 = arith.mulf %71, %80 : vector<16x32xf32>
    %82 = arith.mulf %81, %23 : vector<16x32xf32>
    %83 = arith.truncf %82 : vector<16x32xf32> to vector<16x32xbf16>
    %c32_30 = arith.constant 32 : index
    %c0_31 = arith.constant 0 : index
    %84 = vector.load %arg2[%c32_30, %c0_31] : memref<112x128xbf16, #tpu.memory_space<vmem>>, vector<32x128xbf16>
    %cst_32 = arith.constant dense<0.000000e+00> : vector<16x128xf32>
    %85 = tpu.matmul %83, %84, %cst_32 {dimension_numbers = #tpu.dot_dimension_numbers<[1], [0], [0], [1], [0, 0, 1, 1], [], []>} : vector<16x32xbf16>, vector<32x128xbf16>, vector<16x128xf32> -> vector<16x128xf32>
    %86 = vector.extract_strided_slice %12 {offsets = [1, 0], sizes = [1, 128], strides = [1, 1]} : vector<8x128xf32> to vector<1x128xf32>
    %87 = vector.broadcast %86 : vector<1x128xf32> to vector<16x128xf32>
    %88 = arith.addf %85, %87 : vector<16x128xf32>
    %cst_33 = arith.constant 5.000000e-01 : f32
    %89 = vector.broadcast %cst_33 : f32 to vector<16x128xf32>
    %90 = arith.mulf %89, %88 : vector<16x128xf32>
    %cst_34 = arith.constant 4.471500e-02 : f32
    %91 = vector.broadcast %cst_34 : f32 to vector<16x128xf32>
    %92 = arith.mulf %91, %88 : vector<16x128xf32>
    %93 = arith.mulf %92, %88 : vector<16x128xf32>
    %94 = arith.mulf %93, %88 : vector<16x128xf32>
    %95 = arith.addf %88, %94 : vector<16x128xf32>
    %cst_35 = arith.constant 0.797884583 : f32
    %96 = vector.broadcast %cst_35 : f32 to vector<16x128xf32>
    %97 = arith.mulf %96, %95 : vector<16x128xf32>
    %98 = math.tanh %97 : vector<16x128xf32>
    %cst_36 = arith.constant 1.000000e+00 : f32
    %99 = vector.broadcast %cst_36 : f32 to vector<16x128xf32>
    %100 = arith.addf %99, %98 : vector<16x128xf32>
    %101 = arith.mulf %90, %100 : vector<16x128xf32>
    %102 = arith.truncf %101 : vector<16x128xf32> to vector<16x128xbf16>
    %c64_37 = arith.constant 64 : index
    %c0_38 = arith.constant 0 : index
    %103 = vector.load %arg2[%c64_37, %c0_38] : memref<112x128xbf16, #tpu.memory_space<vmem>>, vector<32x128xbf16>
    %cst_39 = arith.constant dense<0.000000e+00> : vector<16x32xf32>
    %104 = tpu.matmul %102, %103, %cst_39 {dimension_numbers = #tpu.dot_dimension_numbers<[1], [1], [0], [0], [0, 0, 1, 0], [], []>} : vector<16x128xbf16>, vector<32x128xbf16>, vector<16x32xf32> -> vector<16x32xf32>
    %105 = vector.extract_strided_slice %12 {offsets = [5, 0], sizes = [1, 32], strides = [1, 1]} : vector<8x128xf32> to vector<1x32xf32>
    %106 = vector.broadcast %105 : vector<1x32xf32> to vector<16x32xf32>
    %107 = arith.addf %104, %106 : vector<16x32xf32>
    %108 = arith.mulf %107, %1 : vector<16x32xf32>
    %109 = arith.mulf %19, %108 : vector<16x32xf32>
    %110 = arith.addf %71, %109 : vector<16x32xf32>
    %111 = tpu.concatenate %110, %110, %110, %110 in 1 : vector<16x32xf32>, vector<16x32xf32>, vector<16x32xf32>, vector<16x32xf32> -> vector<16x128xf32>
    %c0_40 = arith.constant 0 : index
    %c0_41 = arith.constant 0 : index
    %112 = vector.load %arg4[%c0_40, %c0_41] : memref<16x128xf32, #tpu.memory_space<vmem>>, vector<16x128xf32>
    tpu.vector_store %arg4[%c0_40, %c0_41], %111 {strides = array<i32>} : memref<16x128xf32, #tpu.memory_space<vmem>>, vector<16x128xf32>,
    return
  }
}

</mosaic_0001>

<bundles_post_ra>
// kernel: ada_transformer_block.1
= control target key start
LH: loop header
LB: loop body
LE: loop exit
PB: predicated region body
PF: predicated region fallthrough
CT: control target
= control target key end

     0   :  { %v1488_v2 = vmov 0.0   ;;  %vm1489_vm0 = vmmov 0   ;;  %vm116_vm1 = vcmask 261120   ;;  %vm53_vm2 = vcmask 130048   ;;  %s1491_s6 = smov 16   ;;  %s1492_s9 = smov 96   ;;  %s1801_s0 = inlined_call_operand.vmem [shape: f32[16,128], index: 0, kind: input, shape index: {}]   ;;  %s1802_s2 = inlined_call_operand.vmem [shape: bf16[112,128], index: 2, kind: input, shape index: {}]   ;;  %s1803_s3 = inlined_call_operand.vmem [shape: f32[8,128], index: 3, kind: input, shape index: {}]   ;;  %s1804_s1 = inlined_call_operand.vmem [shape: bf16[80,128], index: 1, kind: input, shape index: {}]   ;;  %s1805_s4 = inlined_call_operand.vmem [shape: f32[16,128], index: 4, kind: output, shape index: {}]  }
   0x1   :  { %v1524_v0 = vld [vmem:[%s1801_s0] sm:$0xff]  ;;  %v1529_v1 = vld [vmem:[%s1801_s0 + $0x8] sm:$0xff]  ;;  %1228 = vmatprep.subr.bf16.mxu0 %v1488_v2  ;;  %1230 = vmatprep.mubr.msk.bf16.mxu0 %vm1489_vm0, %v1488_v2  ;;  %v1429_v4 = vld [vmem:[%s1802_s2 + $0x30] sm:$0xff]   ;;  %s1490_s0 = smov 64   ;;  %v98_v18 = vlaneseq  ;;  %s1493_s10 = smov 48   ;;  %vm624_vm3 = vcmask 523264  }
   0x2   :  { %v20_v3 = vpack.c.bf16 %v1529_v1, %v1524_v0  ;;  %v115_v5 = vmul.f32 %v1529_v1, %v1529_v1  ;;  %1234 = vmatprep.subr.bf16.mxu1 %v1488_v2  ;;  %1238 = vmatprep.mubr.msk.bf16.mxu1 %vm1489_vm0, %v1488_v2  ;;  %v114_v7 = vmul.f32 %v1524_v0, %v1524_v0  ;;  %v1553_v10 = vld [vmem:[%s1802_s2] sm:$0xff]   ;;  %v1560_v11 = vld [vmem:[%s1802_s2 + $0x8] sm:$0xff]   ;;  %v1172_v43 = vld [vmem:[%s1804_s1 + $0x10] sm:$0xff]   ;;  %s1494_s11 = smov 32   ;;  %s1495_s12 = smov 80   ;;  %vm1110_vm4 = vcmask 785408  }
   0x3   :  { %1229 = vmatpush3.bf16.msra.mxu0 %v1429_v4  ;;  %1235 = vmatpush3.bf16.msra.mxu1 %v1553_v10  ;;  %v1563_v19 = vshrl.u32 %v98_v18, 7  ;;  %v1569_v21 = vld [vmem:[%s1803_s3] sm:$0xff]  ;;  %v1171_v38 = vld [vmem:[%s1804_s1 + $0x8] sm:$0xff]   ;;  %v1161_v45 = vunpack.c.l.bf16 %v1172_v43  ;;  %v1162_v46 = vunpack.c.h.bf16 %v1172_v43  ;;  %v1173_v47 = vld [vmem:[%s1804_s1 + $0x18] sm:$0xff]  }
   0x4   :  { %45 = vrot.lane.b32.xlu0 %v20_v3, %s1490_s0  ;;  %v120_v6 = vsel %vm116_vm1, %v115_v5, 0.0  ;;  %v117_v8 = vsel %vm116_vm1, %v114_v7, 0.0  ;;  %1236 = vmatprep.subr.bf16.mxu1 %v1488_v2  ;;  %v1152_v36 = vld [vmem:[%s1804_s1] sm:$0xff]   ;;  %v1157_v40 = vunpack.c.l.bf16 %v1171_v38  ;;  %v1158_v41 = vunpack.c.h.bf16 %v1171_v38 }
   0x5   :  { %121 = vadd.xlane.f32.xlu1 %v120_v6  ;;  %v100_v20 = vsub.s32 2, %v1563_v19  ;;  %v1153_v37 = vunpack.c.l.bf16 %v1152_v36  ;;  %v1154_v39 = vunpack.c.h.bf16 %v1152_v36  ;;  %v1600_v48 = vpack.i.bf16 %v1162_v46, %v1161_v45 }
   0x6   :  { %v1594_v44 = vpack.i.bf16 %v1158_v41, %v1157_v40  ;;  %v1165_v49 = vunpack.c.l.bf16 %v1173_v47  ;;  %v1166_v50 = vunpack.c.h.bf16 %v1173_v47  ;;  %v141_v52 = vsub.s32 0, %v1563_v19 }
   0x7   :  { %1237 = vmatpush3.bf16.msra.mxu1 %v1560_v11  ;;  %v101_v23 = vrot.slane %v1569_v21, %v100_v20  ;;  %v1588_v42 = vpack.i.bf16 %v1154_v39, %v1153_v37 }
   0x8   :  { %v1603_v51 = vpack.i.bf16 %v1166_v50, %v1165_v49  ;;  %v142_v53 = vrot.slane %v1569_v21, %v141_v52 }
  0x16   :  { %1370 = vrot.lane.b32.xlu1 %v1588_v42, %s1491_s6 }
  0x1a   :  { %1375 = vrot.lane.b32.xlu1 %v1594_v44, %s1491_s6 }
  0x1e   :  { %1380 = vrot.lane.b32.xlu1 %v1600_v48, %s1491_s6 }
  0x22   :  { %1385 = vrot.lane.b32.xlu1 %v1603_v51, %s1491_s6 }
  0x23   :  { %118 = vadd.xlane.f32.xlu0 %v117_v8 }
  0x76   :  { %v46_v9 = vpop.permute.xlu0 %45 }
  0x77   :  { %1231 = vmatmul.mubr.msk.bf16.vlgmr.msra.gmra.mrb[0].mxu0 %vm53_vm2, %v46_v9 }
  0x78   :  { %1246 = vmatprep.mubr.msk.f32.mxu0 %vm53_vm2, %v1153_v37 }
  0x92   :  { %v122_v12 = vpop.xlane.xlu1 %121 }
  0x93   :  { %v125_v14 = vmul.f32 0.03125, %v122_v12 }
  0x95   :  { %v127_v16 = vadd.f32 1e-06, %v125_v14 }
  0x96   :  { %v1371_v61 = vpop.permute.xlu1 %1370 }
  0x97   :  { %1436 = vrsqrt.f32 %v127_v16  ;;  %v1373_v63 = vunpack.i.h.bf16 %v1371_v61  ;;  %v1372_v3 = vunpack.i.l.bf16 %v1371_v61 }
  0x9a   :  { %v1376_v62 = vpop.permute.xlu1 %1375 }
  0x9b   :  { %v1378_v8 = vunpack.i.h.bf16 %v1376_v62 }
  0x9e   :  { %v1381_v5 = vpop.permute.xlu1 %1380 }
  0x9f   :  { %v1383_v18 = vunpack.i.h.bf16 %v1381_v5 }
  0xa1   :  { %v1437_v22 = vpop.eup %1436 }
  0xa2   :  { %v131_v29 = vmul.f32 %v1437_v22, %v1529_v1 }
  0xb0   :  { %v119_v13 = vpop.xlane.xlu0 %118 }
  0xb1   :  { %v124_v15 = vmul.f32 0.03125, %v119_v13  ;;  %v1377_v13 = vunpack.i.l.bf16 %v1376_v62 }
  0xb3   :  { %v126_v17 = vadd.f32 1e-06, %v124_v15 }
  0xb5   :  { %1438 = vrsqrt.f32 %v126_v17 }
  0xbf   :  { %v1439_v24 = vpop.eup %1438 }
  0xc0   :  { %v130_v27 = vmul.f32 %v1439_v24, %v1524_v0  ;;  %v1386_v24 = vpop.permute.xlu1 %1385 }
 0x14a   :  { %v1572_v25 = vpop.f32.mrb[0].mxu0 }
 0x14b   :  { %v102_v26 = vadd.f32 %v101_v23, %v1572_v25  ;;  %v1232_v28 = vpop.f32.mrb[1].mxu0 }
 0x14c   :  { %v1577_v30 = vpop.f32.mrb[2].mxu0 }
 0x14d   :  { %v103_v31 = vadd.f32 %v101_v23, %v1577_v30  ;;  %v1233_v32 = vpop.f32.mrb[3].mxu0  ;;  %v132_v33 = vmul.f32 %v130_v27, %v102_v26  ;;  %v1382_v23 = vunpack.i.l.bf16 %v1381_v5 }
 0x14f   :  { %v133_v34 = vmul.f32 %v131_v29, %v103_v31  ;;  %v1388_v31 = vunpack.i.h.bf16 %v1386_v24 }
 0x151   :  { %v134_v35 = vpack.c.bf16 %v133_v34, %v132_v33  ;;  %v1387_v34 = vunpack.i.l.bf16 %v1386_v24 }
 0x153   :  { %1239 = vmatmul.mubr.msk.bf16.vlgmr.msra.gmra.mrb[0].mxu1 %vm116_vm1, %v134_v35 }
 0x226   :  { %v192_v54 = vpop.f32.mrb[0].mxu1 }
 0x227   :  { %v1240_v55 = vpop.f32.mrb[1].mxu1  ;;  %v193_v57 = vadd.f32 %v192_v54, %v142_v53 }
 0x228   :  { %v195_v56 = vpop.f32.mrb[2].mxu1 }
 0x229   :  { %v196_v58 = vadd.f32 %v195_v56, %v142_v53  ;;  %v1241_v59 = vpop.f32.mrb[3].mxu1 }
 0x22b   :  { %v1337_v60 = vpack.c.bf16 %v196_v58, %v193_v57 }
 0x22d   :  { %1338 = vmatprep.subr.bf16.mxu0 %v1337_v60 }
 0x22e   :  { %1340 = vmatpush3.bf16.msra.mxu0 %v1337_v60 }
 0x231   :  { %1247 = vmatmul.mubr.msk.f32.vlgmr.msra.gmra.mrb[4].mxu0 %vm53_vm2, %v1154_v39 }
 0x232   :  { %1249 = vmatprep.mubr.msk.f32.mxu0 %vm53_vm2, %v1157_v40 }
 0x235   :  { %1250 = vmatmul.mubr.msk.f32.gmra.mrb[6].mxu0 %vm53_vm2, %v1158_v41 }
 0x236   :  { %1252 = vmatprep.mubr.msk.f32.mxu0 %vm53_vm2, %v1161_v45 }
 0x239   :  { %1253 = vmatmul.mubr.msk.f32.gmra.mrb[8].mxu0 %vm53_vm2, %v1162_v46 }
 0x23a   :  { %1255 = vmatprep.mubr.msk.f32.mxu0 %vm53_vm2, %v1165_v49 }
 0x23d   :  { %1256 = vmatmul.mubr.msk.f32.gmra.mrb[10].mxu0 %vm53_vm2, %v1166_v50 }
 0x304   :  { %v1615_v4 = vpop.f32.mrb[4].mxu0 }
 0x305   :  { %v353_v6 = vmul.f32 %v1373_v63, %v1615_v4  ;;  %v1618_v7 = vpop.f32.mrb[5].mxu0 }
 0x306   :  { %v352_v9 = vmul.f32 %v1372_v3, %v1618_v7  ;;  %v491_v12 = vpack.c.bf16 %v1615_v4, %v1618_v7 }
 0x308   :  { %v1623_v14 = vpop.f32.mrb[6].mxu0  ;;  %v495_v15 = vpack.c.bf16 %v353_v6, %v352_v9  ;;  %1278 = vmatprep.mubr.msk.bf16.mxu0 %vm116_vm1, %v491_v12 }
 0x309   :  { %v355_v16 = vmul.f32 %v1378_v8, %v1623_v14  ;;  %v1627_v17 = vpop.f32.mrb[7].mxu0 }
 0x30a   :  { %v354_v20 = vmul.f32 %v1377_v13, %v1627_v17  ;;  %v492_v22 = vpack.c.bf16 %v1623_v14, %v1627_v17  ;;  %503 = vrot.lane.b32.xlu1 %v495_v15, %s1492_s9 }
 0x30c   :  { %v1633_v26 = vpop.f32.mrb[8].mxu0  ;;  %v496_v27 = vpack.c.bf16 %v355_v16, %v354_v20 }
 0x30d   :  { %v357_v28 = vmul.f32 %v1383_v18, %v1633_v26  ;;  %v1636_v29 = vpop.f32.mrb[9].mxu0 }
 0x30e   :  { %v356_v32 = vmul.f32 %v1382_v23, %v1636_v29  ;;  %v493_v33 = vpack.c.bf16 %v1633_v26, %v1636_v29  ;;  %505 = vrot.lane.b32.xlu0 %v496_v27, %s1492_s9 }
 0x310   :  { %v1642_v35 = vpop.f32.mrb[10].mxu0  ;;  %v497_v36 = vpack.c.bf16 %v357_v28, %v356_v32 }
 0x311   :  { %v359_v37 = vmul.f32 %v1388_v31, %v1642_v35  ;;  %v1645_v38 = vpop.f32.mrb[11].mxu0 }
 0x312   :  { %v358_v39 = vmul.f32 %v1387_v34, %v1645_v38  ;;  %v494_v40 = vpack.c.bf16 %v1642_v35, %v1645_v38  ;;  %1405 = vrot.lane.b32.xlu0 %v1603_v51, %s1493_s10  ;;  %507 = vrot.lane.b32.xlu1 %v497_v36, %s1492_s9 }
 0x314   :  { %v498_v41 = vpack.c.bf16 %v359_v37, %v358_v39 }
 0x316   :  { %509 = vrot.lane.b32.xlu1 %v498_v41, %s1492_s9  ;;  %410 = vrot.lane.b32.xlu0 %v1560_v11, %s1494_s11 }
 0x31a   :  { %1390 = vrot.lane.b32.xlu1 %v1588_v42, %s1493_s10 }
 0x31e   :  { %1395 = vrot.lane.b32.xlu1 %v1594_v44, %s1493_s10 }
 0x322   :  { %1400 = vrot.lane.b32.xlu1 %v1600_v48, %s1493_s10 }
 0x326   :  { %408 = vrot.lane.b32.xlu1 %v1553_v10, %s1494_s11 }
 0x37c   :  { %v504_v43 = vpop.permute.xlu1 %503 }
 0x37d   :  { %v548_v45 = vsel %vm116_vm1, %v504_v43, 0  ;;  %1357 = vmatprep.subr.msk.bf16.mxu0 %vm116_vm1, %v504_v43 }
 0x37e   :  { %1271 = vmatpush3.bf16.xpose.msra.mxu0 %v548_v45 }
 0x380   :  { %v506_v46 = vpop.permute.xlu0 %505 }
 0x381   :  { %1358 = vmatprep.subr.msk.bf16.mxu0 %vm116_vm1, %v506_v46  ;;  %v551_v11 = vsel %vm116_vm1, %v506_v46, 0 }
 0x384   :  { %v1406_v47 = vpop.permute.xlu0 %1405  ;;  %v508_v49 = vpop.permute.xlu1 %507 }
 0x385   :  { %v1408_v50 = vunpack.i.h.bf16 %v1406_v47  ;;  %v1407_v52 = vunpack.i.l.bf16 %v1406_v47  ;;  %v554_v56 = vsel %vm116_vm1, %v508_v49, 0 }
 0x386   :  { %1273 = vmatpush3.bf16.xpose.msra.mxu0 %v551_v11 }
 0x387   :  { %v390_v53 = vmul.f32 %v1407_v52, %v1645_v38  ;;  %v391_v10 = vmul.f32 %v1408_v50, %v1642_v35  ;;  %1359 = vmatprep.subr.msk.bf16.mxu0 %vm116_vm1, %v508_v49 }
 0x388   :  { %v510_v54 = vpop.permute.xlu1 %509  ;;  %v411_v23 = vpop.permute.xlu0 %410 }
 0x389   :  { %v395_v55 = vpack.c.bf16 %v391_v10, %v390_v53  ;;  %v557_v6 = vsel %vm116_vm1, %v510_v54, 0 }
 0x38c   :  { %v1391_v57 = vpop.permute.xlu1 %1390 }
 0x38d   :  { %v1393_v58 = vunpack.i.h.bf16 %v1391_v57  ;;  %v1392_v59 = vunpack.i.l.bf16 %v1391_v57 }
 0x38e   :  { %1275 = vmatpush3.bf16.xpose.msra.mxu0 %v554_v56 }
 0x38f   :  { %v385_v60 = vmul.f32 %v1393_v58, %v1615_v4  ;;  %v384_v61 = vmul.f32 %v1392_v59, %v1618_v7  ;;  %1360 = vmatprep.subr.msk.bf16.mxu0 %vm116_vm1, %v510_v54 }
 0x390   :  { %v1396_v62 = vpop.permute.xlu1 %1395 }
 0x391   :  { %v1398_v63 = vunpack.i.h.bf16 %v1396_v62  ;;  %v1397_v3 = vunpack.i.l.bf16 %v1396_v62  ;;  %v392_v5 = vpack.c.bf16 %v385_v60, %v384_v61 }
 0x393   :  { %v387_v8 = vmul.f32 %v1398_v63, %v1623_v14  ;;  %v386_v9 = vmul.f32 %v1397_v3, %v1627_v17  ;;  %400 = vrot.lane.b32.xlu1 %v392_v5, %s1490_s0 }
 0x394   :  { %v1401_v12 = vpop.permute.xlu1 %1400 }
 0x395   :  { %v1403_v13 = vunpack.i.h.bf16 %v1401_v12  ;;  %v1402_v15 = vunpack.i.l.bf16 %v1401_v12  ;;  %v393_v4 = vpack.c.bf16 %v387_v8, %v386_v9 }
 0x396   :  { %1277 = vmatpush3.bf16.xpose.msra.mxu0 %v557_v6 }
 0x397   :  { %v389_v7 = vmul.f32 %v1403_v13, %v1633_v26  ;;  %v388_v16 = vmul.f32 %v1402_v15, %v1636_v29  ;;  %402 = vrot.lane.b32.xlu0 %v393_v4, %s1490_s0  ;;  %1329 = vmatprep.subr.bf16.mxu0 %v1488_v2 }
 0x398   :  { %v409_v18 = vpop.permute.xlu1 %408 }
 0x399   :  { %v394_v20 = vpack.c.bf16 %v389_v7, %v388_v16  ;;  %1258 = vmatprep.subr.bf16.mxu1 %v409_v18 }
 0x39a   :  { %1259 = vmatpush3.bf16.msra.mxu1 %v409_v18 }
 0x39b   :  { %406 = vrot.lane.b32.xlu0 %v395_v55, %s1490_s0  ;;  %404 = vrot.lane.b32.xlu1 %v394_v20, %s1490_s0 }
 0x39c   :  { %1260 = vmatprep.subr.bf16.mxu1 %v411_v23 }
 0x39d   :  { %1279 = vmatmul.mubr.msk.bf16.vlgmr.msra.gmra.mrb[12].mxu0 %vm116_vm1, %v492_v22 }
 0x39e   :  { %1282 = vmatprep.mubr.msk.bf16.mxu0 %vm116_vm1, %v493_v33  ;;  %1261 = vmatpush3.bf16.msra.mxu1 %v411_v23 }
 0x39f   :  { %1415 = vrot.lane.b32.xlu0 %v1594_v44, %s1495_s12  ;;  %1410 = vrot.lane.b32.xlu1 %v1588_v42, %s1495_s12 }
 0x3a3   :  { %1425 = vrot.lane.b32.xlu0 %v1603_v51, %s1495_s12  ;;  %1420 = vrot.lane.b32.xlu1 %v1600_v48, %s1495_s12 }
 0x3a5   :  { %1283 = vmatmul.mubr.msk.bf16.gmra.mrb[16].mxu0 %vm116_vm1, %v494_v40 }
 0x3a6   :  { %1333 = vmatprep.mubr.msk.bf16.mxu0 %vm1489_vm0, %v1488_v2 }
 0x405   :  { %v401_v14 = vpop.permute.xlu1 %400 }
 0x406   :  { %1262 = vmatprep.mubr.msk.bf16.mxu1 %vm116_vm1, %v401_v14 }
 0x409   :  { %v403_v17 = vpop.permute.xlu0 %402 }
 0x40a   :  { %1263 = vmatmul.mubr.msk.bf16.vlgmr.msra.gmra.mrb[4].mxu1 %vm116_vm1, %v403_v17 }
 0x40d   :  { %v405_v44 = vpop.permute.xlu1 %404  ;;  %v407_v42 = vpop.permute.xlu0 %406 }
 0x40e   :  { %1266 = vmatprep.mubr.msk.bf16.mxu1 %vm116_vm1, %v405_v44 }
 0x411   :  { %v1411_v48 = vpop.permute.xlu1 %1410  ;;  %v1416_v51 = vpop.permute.xlu0 %1415 }
 0x412   :  { %1267 = vmatmul.mubr.msk.bf16.gmra.mrb[8].mxu1 %vm116_vm1, %v407_v42 }
 0x415   :  { %v1421_v29 = vpop.permute.xlu1 %1420  ;;  %v1426_v36 = vpop.permute.xlu0 %1425 }
 0x470   :  { %v1280_v22 = vpop.f32.mrb[12].mxu0 }
 0x471   :  { %v593_v24 = vpop.f32.mrb[13].mxu0  ;;  %v1483_v34 = vadd.low.f32.bf16 %v1280_v22, %v1416_v51 }
 0x472   :  { %v1480_v26 = vadd.low.f32.bf16 %v593_v24, %v1411_v48  ;;  %v1281_v27 = vpop.f32.mrb[14].mxu0 }
 0x473   :  { %v596_v28 = vpop.f32.mrb[15].mxu0  ;;  %v1481_v31 = vadd.high.f32.bf16 %v1281_v27, %v1416_v51  ;;  %v631_v43 = vsel %vm624_vm3, %v1483_v34, -inf }
 0x474   :  { %v1482_v32 = vadd.high.f32.bf16 %v596_v28, %v1411_v48  ;;  %v625_v33 = vsel %vm624_vm3, %v1480_v26, -inf }
 0x475   :  { %626 = vmax.xlane.f32.xlu1 %v625_v33  ;;  %v634_v38 = vsel %vm624_vm3, %v1481_v31, -inf }
 0x476   :  { %v628_v35 = vsel %vm624_vm3, %v1482_v32, -inf }
 0x477   :  { %629 = vmax.xlane.f32.xlu0 %v628_v35 }
 0x478   :  { %v1284_v37 = vpop.f32.mrb[16].mxu0 }
 0x479   :  { %v609_v39 = vpop.f32.mrb[17].mxu0  ;;  %635 = vmax.xlane.f32.xlu1 %v634_v38  ;;  %v1486_v11 = vadd.low.f32.bf16 %v1284_v37, %v1426_v36 }
 0x47a   :  { %v1484_v40 = vadd.low.f32.bf16 %v609_v39, %v1421_v29  ;;  %v1285_v41 = vpop.f32.mrb[18].mxu0 }
 0x47b   :  { %v612_v45 = vpop.f32.mrb[19].mxu0  ;;  %632 = vmax.xlane.f32.xlu0 %v631_v43  ;;  %v1487_v47 = vadd.high.f32.bf16 %v1285_v41, %v1426_v36  ;;  %v643_v52 = vsel %vm624_vm3, %v1486_v11, -inf }
 0x47c   :  { %v1485_v46 = vadd.high.f32.bf16 %v612_v45, %v1421_v29  ;;  %v637_v49 = vsel %vm624_vm3, %v1484_v40, -inf }
 0x47d   :  { %v646_v53 = vsel %vm624_vm3, %v1487_v47, -inf }
 0x47e   :  { %v640_v50 = vsel %vm624_vm3, %v1485_v46, -inf }
 0x47f   :  { %638 = vmax.xlane.f32.xlu0 %v637_v49  ;;  %641 = vmax.xlane.f32.xlu1 %v640_v50 }
 0x483   :  { %644 = vmax.xlane.f32.xlu0 %v643_v52  ;;  %647 = vmax.xlane.f32.xlu1 %v646_v53 }
 0x4dd   :  { %v1264_v10 = vpop.f32.mrb[4].mxu1 }
 0x4de   :  { %v460_v54 = vpop.f32.mrb[5].mxu1 }
 0x4df   :  { %v1265_v55 = vpop.f32.mrb[6].mxu1 }
 0x4e0   :  { %v718_v56 = vpack.c.bf16 %v1265_v55, %v1264_v10  ;;  %v463_v57 = vpop.f32.mrb[7].mxu1 }
 0x4e1   :  { %v717_v58 = vpack.c.bf16 %v463_v57, %v460_v54 }
 0x4e3   :  { %1286 = vmatprep.subr.bf16.mxu1 %v717_v58 }
 0x4e4   :  { %1287 = vmatpush3.bf16.msra.mxu1 %v717_v58 }
 0x4e5   :  { %v1268_v59 = vpop.f32.mrb[8].mxu1  ;;  %1288 = vmatprep.subr.bf16.mxu1 %v718_v56 }
 0x4e6   :  { %v476_v60 = vpop.f32.mrb[9].mxu1 }
 0x4e7   :  { %v1269_v61 = vpop.f32.mrb[10].mxu1 }
 0x4e8   :  { %v720_v62 = vpack.c.bf16 %v1269_v61, %v1268_v59  ;;  %v479_v63 = vpop.f32.mrb[11].mxu1  ;;  %1289 = vmatpush3.bf16.msra.mxu1 %v718_v56 }
 0x4e9   :  { %v719_v3 = vpack.c.bf16 %v479_v63, %v476_v60 }
 0x4eb   :  { %1290 = vmatprep.subr.bf16.mxu1 %v719_v3 }
 0x4ec   :  { %1291 = vmatpush3.bf16.msra.mxu1 %v719_v3 }
 0x4ed   :  { %1292 = vmatprep.subr.bf16.mxu1 %v720_v62 }
 0x4f0   :  { %1293 = vmatpush3.bf16.msra.mxu1 %v720_v62 }
 0x502   :  { %v627_v5 = vpop.xlane.xlu1 %626 }
 0x503   :  { %v649_v6 = vsub.f32 %v1480_v26, %v627_v5 }
 0x504   :  { %v630_v8 = vpop.xlane.xlu0 %629 }
 0x505   :  { %v657_v9 = vmul.f32 1.442695, %v649_v6  ;;  %v650_v12 = vsub.f32 %v1482_v32, %v630_v8 }
 0x506   :  { %v636_v13 = vpop.xlane.xlu1 %635 }
 0x507   :  { %1440 = vpow2.f32 %v657_v9  ;;  %v659_v15 = vmul.f32 1.442695, %v650_v12  ;;  %v652_v4 = vsub.f32 %v1481_v31, %v636_v13 }
 0x508   :  { %v633_v7 = vpop.xlane.xlu0 %632 }
 0x509   :  { %1442 = vpow2.f32 %v659_v15  ;;  %v663_v16 = vmul.f32 1.442695, %v652_v4  ;;  %v651_v18 = vsub.f32 %v1483_v34, %v633_v7 }
 0x50b   :  { %1444 = vpow2.f32 %v663_v16  ;;  %v661_v20 = vmul.f32 1.442695, %v651_v18 }
 0x50c   :  { %v639_v23 = vpop.xlane.xlu0 %638  ;;  %v642_v14 = vpop.xlane.xlu1 %641 }
 0x50d   :  { %1446 = vpow2.f32 %v661_v20  ;;  %v653_v17 = vsub.f32 %v1484_v40, %v639_v23  ;;  %v654_v44 = vsub.f32 %v1485_v46, %v642_v14 }
 0x50f   :  { %v665_v42 = vmul.f32 1.442695, %v653_v17  ;;  %v667_v48 = vmul.f32 1.442695, %v654_v44  ;;  %v1174_v44 = vld [vmem:[%s1804_s1 + $0x20] sm:$0xff]  }
 0x510   :  { %v645_v51 = vpop.xlane.xlu0 %644  ;;  %v648_v22 = vpop.xlane.xlu1 %647 }
 0x511   :  { %v1441_v24 = vpop.eup %1440  ;;  %1448 = vpow2.f32 %v665_v42  ;;  %v655_v26 = vsub.f32 %v1486_v11, %v645_v51  ;;  %v656_v27 = vsub.f32 %v1487_v47, %v648_v22  ;;  %v106_v47 = vsub.s32 3, %v1563_v19 }
 0x512   :  { %1450 = vpow2.f32 %v667_v48  ;;  %v673_v28 = vsel %vm624_vm3, %v1441_v24, 0.0  ;;  %v1169_v42 = vunpack.c.l.bf16 %v1174_v44 }
 0x513   :  { %v1443_v29 = vpop.eup %1442  ;;  %v669_v31 = vmul.f32 1.442695, %v655_v26  ;;  %v671_v32 = vmul.f32 1.442695, %v656_v27  ;;  %674 = vadd.xlane.f32.xlu0 %v673_v28  ;;  %v107_v49 = vrot.slane %v1569_v21, %v106_v47 }
 0x514   :  { %v676_v33 = vsel %vm624_vm3, %v1443_v29, 0.0 }
 0x515   :  { %v1445_v34 = vpop.eup %1444  ;;  %1452 = vpow2.f32 %v669_v31  ;;  %677 = vadd.xlane.f32.xlu1 %v676_v33 }
 0x516   :  { %1454 = vpow2.f32 %v671_v32  ;;  %v682_v37 = vsel %vm624_vm3, %v1445_v34, 0.0 }
 0x517   :  { %v1447_v35 = vpop.eup %1446 }
 0x518   :  { %v679_v36 = vsel %vm624_vm3, %v1447_v35, 0.0 }
 0x519   :  { %680 = vadd.xlane.f32.xlu0 %v679_v36  ;;  %683 = vadd.xlane.f32.xlu1 %v682_v37  ;;  %v800_v36 = vsub.s32 4, %v1563_v19 }
 0x51b   :  { %v1449_v38 = vpop.eup %1448  ;;  %v801_v37 = vrot.slane %v1569_v21, %v800_v36 }
 0x51c   :  { %v1451_v39 = vpop.eup %1450  ;;  %v685_v40 = vsel %vm624_vm3, %v1449_v38, 0.0 }
 0x51d   :  { %686 = vadd.xlane.f32.xlu0 %v685_v40  ;;  %v688_v41 = vsel %vm624_vm3, %v1451_v39, 0.0 }
 0x51e   :  { %689 = vadd.xlane.f32.xlu1 %v688_v41 }
 0x51f   :  { %v1453_v43 = vpop.eup %1452 }
 0x520   :  { %v1455_v45 = vpop.eup %1454  ;;  %v691_v46 = vsel %vm624_vm3, %v1453_v43, 0.0 }
 0x521   :  { %692 = vadd.xlane.f32.xlu0 %v691_v46  ;;  %v694_v11 = vsel %vm624_vm3, %v1455_v45, 0.0 }
 0x522   :  { %695 = vadd.xlane.f32.xlu1 %v694_v11 }
 0x537   :  { %109 = vrot.lane.b32.xlu0 %v107_v49, %s1490_s0 }
 0x5a0   :  { %v675_v50 = vpop.xlane.xlu0 %674 }
 0x5a1   :  { %1456 = vrcp.f32 %v675_v50 }
 0x5a2   :  { %v678_v52 = vpop.xlane.xlu1 %677 }
 0x5a3   :  { %1458 = vrcp.f32 %v678_v52  ;;  %v1433_v52 = vld [vmem:[%s1802_s2 + $0x18] sm:$0xff]  }
 0x5a6   :  { %v681_v53 = vpop.xlane.xlu0 %680  ;;  %v684_v10 = vpop.xlane.xlu1 %683 }
 0x5a7   :  { %1460 = vrcp.f32 %v681_v53 }
 0x5a8   :  { %1462 = vrcp.f32 %v684_v10 }
 0x5aa   :  { %v687_v54 = vpop.xlane.xlu0 %686 }
 0x5ab   :  { %v1457_v55 = vpop.eup %1456  ;;  %1464 = vrcp.f32 %v687_v54  ;;  %v690_v56 = vpop.xlane.xlu1 %689 }
 0x5ac   :  { %1466 = vrcp.f32 %v690_v56  ;;  %v705_v59 = vmul.f32 %v1457_v55, %v1441_v24 }
 0x5ad   :  { %v1459_v57 = vpop.eup %1458 }
 0x5ae   :  { %v693_v58 = vpop.xlane.xlu0 %692  ;;  %v706_v60 = vmul.f32 %v1459_v57, %v1443_v29 }
 0x5af   :  { %1468 = vrcp.f32 %v693_v58  ;;  %v696_v61 = vpop.xlane.xlu1 %695 }
 0x5b0   :  { %1470 = vrcp.f32 %v696_v61  ;;  %v713_v62 = vpack.c.bf16 %v706_v60, %v705_v59 }
 0x5b1   :  { %v1461_v63 = vpop.eup %1460 }
 0x5b2   :  { %v1463_v3 = vpop.eup %1462  ;;  %v707_v5 = vmul.f32 %v1461_v63, %v1447_v35  ;;  %v110_v6 = vpop.permute.xlu0 %109  ;;  %1294 = vmatprep.mubr.msk.bf16.mxu1 %vm624_vm3, %v713_v62  ;;  %v1170_v35 = vunpack.c.h.bf16 %v1174_v44 }
 0x5b3   :  { %v708_v8 = vmul.f32 %v1463_v3, %v1445_v34  ;;  %v113_v9 = vadd.f32 %v110_v6, %v1577_v30  ;;  %v112_v50 = vadd.f32 %v110_v6, %v1572_v25  ;;  %v1434_v6 = vld [vmem:[%s1802_s2 + $0x20] sm:$0xff]  }
 0x5b4   :  { %1330 = vmatpush3.bf16.xpose.msra.mxu0 %v1434_v6 }
 0x5b5   :  { %v1465_v12 = vpop.eup %1464  ;;  %v714_v13 = vpack.c.bf16 %v708_v8, %v707_v5  ;;  %905 = vrot.lane.b32.xlu0 %v113_v9, %s1490_s0  ;;  %1331 = vmatprep.subr.bf16.mxu0 %v1488_v2  ;;  %v1435_v8 = vld [vmem:[%s1802_s2 + $0x28] sm:$0xff]   ;;  %v918_v9 = vsub.s32 1, %v1563_v19 }
 0x5b6   :  { %v1467_v15 = vpop.eup %1466  ;;  %v709_v4 = vmul.f32 %v1465_v12, %v1449_v38 }
 0x5b7   :  { %1295 = vmatmul.mubr.msk.bf16.vlgmr.msra.gmra.mrb[12].mxu1 %vm624_vm3, %v714_v13  ;;  %v710_v7 = vmul.f32 %v1467_v15, %v1451_v39  ;;  %v919_v12 = vrot.slane %v1569_v21, %v918_v9 }
 0x5b9   :  { %v1469_v16 = vpop.eup %1468  ;;  %v715_v18 = vpack.c.bf16 %v710_v7, %v709_v4  ;;  %1058 = vrot.lane.b32.xlu0 %v1524_v0, %s1492_s9 }
 0x5ba   :  { %v1471_v20 = vpop.eup %1470  ;;  %v711_v23 = vmul.f32 %v1469_v16, %v1453_v43 }
 0x5bb   :  { %1298 = vmatprep.mubr.msk.bf16.mxu1 %vm624_vm3, %v715_v18  ;;  %v712_v14 = vmul.f32 %v1471_v20, %v1455_v45 }
 0x5bc   :  { %1332 = vmatpush3.bf16.xpose.msra.mxu0 %v1435_v8 }
 0x5bd   :  { %v716_v17 = vpack.c.bf16 %v712_v14, %v711_v23 }
 0x5bf   :  { %1299 = vmatmul.mubr.msk.bf16.gmra.mrb[16].mxu1 %vm624_vm3, %v716_v17 }
 0x5c0   :  { %1318 = vmatprep.mubr.msk.f32.mxu1 %vm624_vm3, %v1169_v42 }
 0x627   :  { %v906_v61 = vpop.permute.xlu0 %905 }
 0x68a   :  { %v1296_v48 = vpop.f32.mrb[12].mxu1 }
 0x68b   :  { %v767_v51 = vpop.f32.mrb[13].mxu1 }
 0x68c   :  { %v1297_v22 = vpop.f32.mrb[14].mxu1 }
 0x68d   :  { %v1345_v24 = vpack.c.bf16 %v1297_v22, %v1296_v48  ;;  %v770_v26 = vpop.f32.mrb[15].mxu1 }
 0x68e   :  { %v1341_v27 = vpack.c.bf16 %v770_v26, %v767_v51 }
 0x690   :  { %1342 = vmatprep.subr.bf16.mxu1 %v1341_v27 }
 0x691   :  { %1344 = vmatpush3.bf16.msra.mxu1 %v1341_v27 }
 0x692   :  { %v1300_v28 = vpop.f32.mrb[16].mxu1  ;;  %1346 = vmatprep.subr.bf16.mxu1 %v1345_v24 }
 0x693   :  { %v783_v29 = vpop.f32.mrb[17].mxu1 }
 0x694   :  { %v1301_v31 = vpop.f32.mrb[18].mxu1 }
 0x695   :  { %v1353_v32 = vpack.c.bf16 %v1301_v31, %v1300_v28  ;;  %v786_v33 = vpop.f32.mrb[19].mxu1  ;;  %1348 = vmatpush3.bf16.msra.mxu1 %v1345_v24 }
 0x696   :  { %v1349_v34 = vpack.c.bf16 %v786_v33, %v783_v29 }
 0x698   :  { %1350 = vmatprep.subr.bf16.mxu1 %v1349_v34 }
 0x699   :  { %1352 = vmatpush3.bf16.msra.mxu1 %v1349_v34 }
 0x69a   :  { %1354 = vmatprep.subr.bf16.mxu1 %v1353_v32 }
 0x69d   :  { %1356 = vmatpush3.bf16.msra.mxu1 %v1353_v32 }
 0x69e   :  { %1321 = vmatprep.subr.bf16.mxu1 %v1488_v2 }
 0x6a0   :  { %1319 = vmatmul.mubr.msk.f32.vlgmr.msra.gmra.mrb[20].mxu1 %vm624_vm3, %v1170_v35  ;;  %v1001_v35 = vsub.s32 5, %v1563_v19 }
 0x6a1   :  { %1325 = vmatprep.mubr.msk.bf16.mxu1 %vm1489_vm0, %v1488_v2 }
 0x6a2   :  { %v1002_v36 = vrot.slane %v1569_v21, %v1001_v35 }
 0x773   :  { %v1320_v38 = vpop.f32.mrb[20].mxu1 }
 0x774   :  { %v880_v39 = vadd.f32 %v1320_v38, %v801_v37  ;;  %v874_v40 = vpop.f32.mrb[21].mxu1  ;;  %v1059_v38 = vpop.permute.xlu0 %1058 }
 0x775   :  { %v875_v41 = vadd.f32 %v874_v40, %v801_v37 }
 0x776   :  { %v1741_v43 = vadd.f32 %v880_v39, %v1529_v1 }
 0x777   :  { %v1744_v45 = vadd.f32 %v875_v41, %v1524_v0  ;;  %v1432_v0 = vld [vmem:[%s1802_s2 + $0x10] sm:$0xff]  }
 0x778   :  { %v886_v46 = vmul.f32 %v1741_v43, %v1741_v43  ;;  %1322 = vmatpush3.bf16.msra.mxu1 %v1432_v0 }
 0x779   :  { %v885_v47 = vmul.f32 %v1744_v45, %v1744_v45  ;;  %1323 = vmatprep.subr.bf16.mxu1 %v1488_v2 }
 0x77a   :  { %v890_v11 = vsel %vm116_vm1, %v886_v46, 0.0 }
 0x77b   :  { %891 = vadd.xlane.f32.xlu1 %v890_v11  ;;  %v887_v49 = vsel %vm116_vm1, %v885_v47, 0.0 }
 0x77c   :  { %1324 = vmatpush3.bf16.msra.mxu1 %v1433_v52 }
 0x77f   :  { %888 = vadd.xlane.f32.xlu1 %v887_v49 }
 0x790   :  { %903 = vrot.lane.b32.xlu1 %v112_v50, %s1490_s0 }
 0x794   :  { %1060 = vrot.lane.b32.xlu1 %v1529_v1, %s1492_s9 }
 0x808   :  { %v892_v53 = vpop.xlane.xlu1 %891 }
 0x809   :  { %v894_v10 = vmul.f32 0.03125, %v892_v53 }
 0x80b   :  { %v896_v54 = vadd.f32 1e-06, %v894_v10 }
 0x80c   :  { %v889_v55 = vpop.xlane.xlu1 %888 }
 0x80d   :  { %1472 = vrsqrt.f32 %v896_v54  ;;  %v893_v56 = vmul.f32 0.03125, %v889_v55 }
 0x80f   :  { %v895_v57 = vadd.f32 1e-06, %v893_v56 }
 0x810   :  { %v904_v62 = vpop.permute.xlu1 %903 }
 0x811   :  { %1474 = vrsqrt.f32 %v895_v57 }
 0x814   :  { %v1061_v46 = vpop.permute.xlu1 %1060 }
 0x817   :  { %v1473_v1 = vpop.eup %1472 }
 0x818   :  { %v900_v58 = vmul.f32 %v1473_v1, %v1741_v43 }
 0x81a   :  { %v910_v63 = vmul.f32 %v906_v61, %v900_v58 }
 0x81b   :  { %v1475_v59 = vpop.eup %1474 }
 0x81c   :  { %v899_v60 = vmul.f32 %v1475_v59, %v1744_v45 }
 0x81e   :  { %v909_v3 = vmul.f32 %v904_v62, %v899_v60 }
 0x820   :  { %v911_v5 = vpack.c.bf16 %v910_v63, %v909_v3 }
 0x822   :  { %1326 = vmatmul.mubr.msk.bf16.vlgmr.msra.gmra.mrb[24].mxu1 %vm116_vm1, %v911_v5 }
 0x8f5   :  { %v969_v13 = vpop.f32.mrb[24].mxu1 }
 0x8f6   :  { %v970_v15 = vadd.f32 %v969_v13, %v919_v12  ;;  %v1327_v4 = vpop.f32.mrb[25].mxu1 }
 0x8f7   :  { %v972_v7 = vpop.f32.mrb[26].mxu1 }
 0x8f8   :  { %v978_v16 = vmul.f32 0.044715, %v970_v15  ;;  %v973_v18 = vadd.f32 %v972_v7, %v919_v12  ;;  %v1328_v20 = vpop.f32.mrb[27].mxu1  ;;  %v976_v28 = vmul.f32 0.5, %v970_v15 }
 0x8fa   :  { %v980_v23 = vmul.f32 %v978_v16, %v970_v15  ;;  %v979_v14 = vmul.f32 0.044715, %v973_v18  ;;  %v977_v29 = vmul.f32 0.5, %v973_v18 }
 0x8fc   :  { %v982_v17 = vmul.f32 %v980_v23, %v970_v15  ;;  %v981_v2 = vmul.f32 %v979_v14, %v973_v18 }
 0x8fe   :  { %v984_v44 = vadd.f32 %v982_v17, %v970_v15  ;;  %v983_v42 = vmul.f32 %v981_v2, %v973_v18 }
 0x900   :  { %v986_v48 = vmul.f32 0.7978846, %v984_v44  ;;  %v985_v51 = vadd.f32 %v983_v42, %v973_v18 }
 0x902   :  { %1476 = vtanh.f32 %v986_v48  ;;  %v987_v22 = vmul.f32 0.7978846, %v985_v51 }
 0x904   :  { %1478 = vtanh.f32 %v987_v22 }
 0x90c   :  { %v1477_v24 = vpop.eup %1476 }
 0x90d   :  { %v990_v26 = vadd.f32 1.0, %v1477_v24 }
 0x90e   :  { %v1479_v27 = vpop.eup %1478 }
 0x90f   :  { %v991_v31 = vadd.f32 1.0, %v1479_v27  ;;  %v992_v32 = vmul.f32 %v990_v26, %v976_v28 }
 0x911   :  { %v993_v33 = vmul.f32 %v991_v31, %v977_v29 }
 0x913   :  { %v994_v34 = vpack.c.bf16 %v993_v33, %v992_v32 }
 0x915   :  { %1334 = vmatmul.mubr.bf16.vlgmr.msra.gmra.mrb[20].mxu0 %v994_v34 }
 0x9e8   :  { %v1049_v37 = vpop.f32.mrb[20].mxu0 }
 0x9e9   :  { %v1050_v39 = vadd.f32 %v1049_v37, %v1002_v36  ;;  %v1335_v40 = vpop.f32.mrb[21].mxu0 }
 0x9ea   :  { %v1052_v41 = vpop.f32.mrb[22].mxu0 }
 0x9eb   :  { %v1064_v11 = vmul.f32 %v1059_v38, %v1050_v39  ;;  %v1053_v47 = vadd.f32 %v1052_v41, %v1002_v36  ;;  %v1336_v49 = vpop.f32.mrb[23].mxu0 }
 0x9ed   :  { %v1065_v50 = vmul.f32 %v1061_v46, %v1053_v47  ;;  %1068 = vrot.lane.b32.xlu0 %v1064_v11, %s1494_s11 }
 0x9ef   :  { %1070 = vrot.lane.b32.xlu1 %v1065_v50, %s1494_s11 }
 0xa5f   :  { %v1069_v0 = vpop.permute.xlu0 %1068 }
 0xa60   :  { %v1074_v52 = vmul.f32 %v1069_v0, %v1572_v25 }
 0xa61   :  { %v1071_v19 = vpop.permute.xlu1 %1070 }
 0xa62   :  { %v1075_v21 = vmul.f32 %v1071_v19, %v1577_v30  ;;  %1078 = vrot.lane.b32.xlu0 %v1074_v52, %s1492_s9 }
 0xa64   :  { %1080 = vrot.lane.b32.xlu1 %v1075_v21, %s1492_s9 }
 0xad4   :  { %v1079_v53 = vpop.permute.xlu0 %1078 }
 0xad5   :  { %v1084_v10 = vadd.f32 %v1079_v53, %v1744_v45 }
 0xad6   :  { %v1081_v54 = vpop.permute.xlu1 %1080 }
 0xad7   :  { %v1085_v55 = vadd.f32 %v1081_v54, %v1741_v43  ;;  %1088 = vrot.lane.b32.xlu0 %v1084_v10, %s1494_s11 }
 0xad9   :  { %1090 = vrot.lane.b32.xlu1 %v1085_v55, %s1494_s11 }
 0xadb   :  { %1094 = vrot.lane.b32.xlu0 %v1084_v10, %s1490_s0 }
 0xadd   :  { %1096 = vrot.lane.b32.xlu1 %v1085_v55, %s1490_s0 }
 0xadf   :  { %1100 = vrot.lane.b32.xlu0 %v1084_v10, %s1492_s9 }
 0xae1   :  { %1102 = vrot.lane.b32.xlu1 %v1085_v55, %s1492_s9 }
 0xb49   :  { %v1089_v25 = vpop.permute.xlu0 %1088 }
 0xb4a   :  { %v1106_v45 = vsel %vm116_vm1, %v1084_v10, %v1089_v25 }
 0xb4b   :  { %v1091_v30 = vpop.permute.xlu1 %1090 }
 0xb4c   :  { %v1107_v58 = vsel %vm116_vm1, %v1085_v55, %v1091_v30 }
 0xb4d   :  { %v1095_v56 = vpop.permute.xlu0 %1094 }
 0xb4e   :  { %v1108_v43 = vsel %vm624_vm3, %v1106_v45, %v1095_v56 }
 0xb4f   :  { %v1097_v57 = vpop.permute.xlu1 %1096 }
 0xb50   :  { %v1109_v60 = vsel %vm624_vm3, %v1107_v58, %v1097_v57 }
 0xb51   :  { %v1101_v1 = vpop.permute.xlu0 %1100 }
 0xb52   :  { %v1111_v59 = vsel %vm1110_vm4, %v1108_v43, %v1101_v1 }
 0xb53   :  { %1113 = vst [vmem:[%s1805_s4] sm:$0xff] %v1111_v59  ;;  %v1103_v61 = vpop.permute.xlu1 %1102 }
 0xb54   :  { %v1112_v62 = vsel %vm1110_vm4, %v1109_v60, %v1103_v61 }
 0xb55   :  { %1114 = vst [vmem:[%s1805_s4 + $0x8] sm:$0xff] %v1112_v62 }

</bundles_post_ra>
